<compile_context>
chip_gen: v7x
topology: tpu7x:2x2x1
jax: 0.10.0
libtpu: 0.0.40
codegen_flags: <defaults>
</compile_context>

<pallas_src>
import functools
import math

import jax
import jax.numpy as jnp
from jax.experimental import pallas as pl
from jax.experimental.pallas import tpu as pltpu


# --------------------------------------------------------------------- utils --

def _gelu(x):
    # tanh-approximate GELU (VPU/EUP friendly).
    # TODO(synk): PyTorch nn.GELU()/F.gelu default to the exact erf form; the
    # tanh approximation deviates by at most ~1e-3.
    c = math.sqrt(2.0 / math.pi)
    return 0.5 * x * (1.0 + jnp.tanh(c * (x + 0.044715 * x * x * x)))


def _round_up(x, m):
    return (x + m - 1) // m * m


@functools.lru_cache(maxsize=1)
def _vmem_budget():
    """Per-generation VMEM budget (bytes) used for tile selection and
    vmem_limit_bytes: ~75% of physical, capped at 96 MiB
    (-> ~48 MiB on v7x, 96 MiB on v5e/v6e)."""
    phys = None
    try:
        phys = getattr(pltpu.get_tpu_info(), "vmem_capacity_bytes", None)
    except Exception:
        phys = None
    if not phys:
        phys = 64 * 1024 * 1024          # conservative default: v7x physical
    return int(min(phys * 3 // 4, 96 * 1024 * 1024))


# ------------------------------------------------------------ fused kernels --
# Weight-stationary fused FFN: weights/biases are full-extent blocks with a
# constant index_map (one HBM fetch per call); the hidden activation stays in
# VMEM/vregs — no intermediate HBM write/read.

def _ffn_gelu_kernel(x_ref, w1_ref, b1_ref, w2_ref, b2_ref, o_ref):
    x = x_ref[...]
    h = jnp.dot(x, w1_ref[...], preferred_element_type=jnp.float32)
    h = _gelu(h + b1_ref[...].astype(jnp.float32)).astype(jnp.bfloat16)
    # nn.Dropout(p=0.0) is the identity.
    y = jnp.dot(h, w2_ref[...], preferred_element_type=jnp.float32)
    o_ref[...] = (y + b2_ref[...].astype(jnp.float32)).astype(o_ref.dtype)


def _ffn_geglu_kernel(x_ref, wa_ref, ba_ref, wb_ref, bb_ref, w2_ref, b2_ref, o_ref):
    x = x_ref[...]
    a = jnp.dot(x, wa_ref[...], preferred_element_type=jnp.float32)
    g = jnp.dot(x, wb_ref[...], preferred_element_type=jnp.float32)
    a = a + ba_ref[...].astype(jnp.float32)
    g = g + bb_ref[...].astype(jnp.float32)
    h = (a * _gelu(g)).astype(jnp.bfloat16)
    y = jnp.dot(h, w2_ref[...], preferred_element_type=jnp.float32)
    o_ref[...] = (y + b2_ref[...].astype(jnp.float32)).astype(o_ref.dtype)


# ------------------------------------------------------------ tiled kernels --
# Fallback (M, N, K)-grid kernels for weights too large to stay VMEM-resident.

def _linear_kernel(x_ref, w_ref, b_ref, o_ref, acc_ref, *, activation):
    k = pl.program_id(2)

    @pl.when(k == 0)
    def _():
        acc_ref[...] = jnp.zeros_like(acc_ref)

    acc_ref[...] += jnp.dot(x_ref[...], w_ref[...],
                            preferred_element_type=jnp.float32)

    @pl.when(k == pl.num_programs(2) - 1)
    def _():
        h = acc_ref[...] + b_ref[...].astype(jnp.float32)
        if activation == "gelu":
            h = _gelu(h)
        o_ref[...] = h.astype(o_ref.dtype)


def _geglu_proj_kernel(x_ref, wa_ref, wb_ref, ba_ref, bb_ref, o_ref,
                       acc_a_ref, acc_b_ref):
    k = pl.program_id(2)

    @pl.when(k == 0)
    def _():
        acc_a_ref[...] = jnp.zeros_like(acc_a_ref)
        acc_b_ref[...] = jnp.zeros_like(acc_b_ref)

    x = x_ref[...]
    acc_a_ref[...] += jnp.dot(x, wa_ref[...], preferred_element_type=jnp.float32)
    acc_b_ref[...] += jnp.dot(x, wb_ref[...], preferred_element_type=jnp.float32)

    @pl.when(k == pl.num_programs(2) - 1)
    def _():
        a = acc_a_ref[...] + ba_ref[...].astype(jnp.float32)
        g = acc_b_ref[...] + bb_ref[...].astype(jnp.float32)
        o_ref[...] = (a * _gelu(g)).astype(o_ref.dtype)


# ----------------------------------------------------------- tile selection --

_M_PREFS = (1024, 512, 256, 128, 64, 32, 16, 8)
_N_PREFS = (512, 256, 128)          # 256-multiples feed the 2x256x256 MXU fully
_K_PREFS = (2048, 1024, 512, 256, 128)


def _pick_tile(dim, prefs):
    for p in prefs:
        if dim >= p and dim % p == 0:
            return p
    return dim  # full extent is always a legal block shape


def _choose_tm(m, fits):
    """Largest row-block from _M_PREFS that fits the VMEM budget, wastes <25%
    of rows to padding, and (for large m) keeps >=2 blocks on the 'parallel'
    M axis so v7x's second TensorCore has work."""
    cands = []
    for t in _M_PREFS:
        if t > max(_round_up(m, 8), 8):
            continue
        waste = _round_up(m, t) - m
        if waste * 4 > m and t > 8:
            continue
        if fits(t):
            cands.append(t)
    if not cands:
        return None
    tm = cands[0]
    if m > 256 and _round_up(m, tm) // tm < 2:
        two_plus = [t for t in cands if _round_up(m, t) // t >= 2]
        if two_plus:
            tm = two_plus[0]
    return tm


def _pad_rows(x, m_pad):
    m = x.shape[0]
    return x if m_pad == m else jnp.pad(x, ((0, m_pad - m), (0, 0)))


# ----------------------------------------------------------------- wrappers --

def ffn_fused_pallas(x2, params, glu, inner, dim_out, out_dtype):
    """Fused, weight-stationary FFN. Returns None if the weights do not fit
    the per-generation VMEM budget (caller falls back to the tiled path)."""
    budget = _vmem_budget()
    m, dim = x2.shape
    out1 = 2 * inner if glu else inner
    out_bytes = jnp.dtype(out_dtype).itemsize

    def vmem_bytes(tm):
        x_buf = 2 * tm * dim * 2                              # x tile, dbl-buffered
        w_buf = 2 * dim * out1 * 2 + 2 * inner * dim_out * 2  # resident weights
        b_buf = 2 * out1 * 4 + 2 * dim_out * 4
        o_buf = 2 * tm * dim_out * out_bytes
        hid = tm * out1 * 4 + tm * inner * 2                  # f32 hidden + bf16 copy
        return x_buf + w_buf + b_buf + o_buf + hid

    tm = _choose_tm(m, lambda t: vmem_bytes(t) <= budget)
    if tm is None:
        return None

    m_pad = _round_up(m, tm)
    xp = _pad_rows(x2, m_pad)
    grid = (m_pad // tm,)

    x_spec = pl.BlockSpec((tm, dim), lambda i: (i, 0))
    out_spec = pl.BlockSpec((tm, dim_out), lambda i: (i, 0))
    w2_spec = pl.BlockSpec((inner, dim_out), lambda i: (0, 0))
    b2_spec = pl.BlockSpec((1, dim_out), lambda i: (0, 0))
    cp = pltpu.CompilerParams(dimension_semantics=("parallel",),
                              vmem_limit_bytes=budget)

    if glu:
        w_spec = pl.BlockSpec((dim, inner), lambda i: (0, 0))
        b_spec = pl.BlockSpec((1, inner), lambda i: (0, 0))
        y = pl.pallas_call(
            _ffn_geglu_kernel,
            out_shape=jax.ShapeDtypeStruct((m_pad, dim_out), out_dtype),
            grid_spec=pltpu.PrefetchScalarGridSpec(
                num_scalar_prefetch=0, grid=grid,
                in_specs=[x_spec, w_spec, b_spec, w_spec, b_spec, w2_spec, b2_spec],
                out_specs=out_spec),
            compiler_params=cp,
        )(xp, params["wa_t"], params["ba"], params["wb_t"], params["bb"],
          params["w2_t"], params["b2_row"])
    else:
        w1_spec = pl.BlockSpec((dim, out1), lambda i: (0, 0))
        b1_spec = pl.BlockSpec((1, out1), lambda i: (0, 0))
        y = pl.pallas_call(
            _ffn_gelu_kernel,
            out_shape=jax.ShapeDtypeStruct((m_pad, dim_out), out_dtype),
            grid_spec=pltpu.PrefetchScalarGridSpec(
                num_scalar_prefetch=0, grid=grid,
                in_specs=[x_spec, w1_spec, b1_spec, w2_spec, b2_spec],
                out_specs=out_spec),
            compiler_params=cp,
        )(xp, params["w1_t"], params["b1_row"], params["w2_t"], params["b2_row"])

    return y if m_pad == m else y[:m]


def linear_pallas(x, w_t, b, out_dtype, activation=None):
    """y = activation(x @ w_t + b); x:(M,K) bf16, w_t:(K,N) bf16, b:(1,N) f32."""
    budget = _vmem_budget()
    m, kdim = x.shape
    n = w_t.shape[1]
    out_bytes = jnp.dtype(out_dtype).itemsize
    tn = _pick_tile(n, _N_PREFS)
    tk = _pick_tile(kdim, _K_PREFS)

    def foot(tm, tn, tk):
        return (2 * tm * tk * 2 + 2 * tk * tn * 2 + 2 * tn * 4
                + 2 * tm * tn * out_bytes + tm * tn * 4)

    tm = _choose_tm(m, lambda t: foot(t, tn, tk) <= budget)
    while tm is None and tk > 128 and tk % 2 == 0:
        tk //= 2
        tm = _choose_tm(m, lambda t: foot(t, tn, tk) <= budget)
    if tm is None:
        tm = 8  # TODO(synk): pathological unaligned N/K full-extent fallback

    m_pad = _round_up(m, tm)
    xp = _pad_rows(x, m_pad)
    grid = (m_pad // tm, n // tn, kdim // tk)
    kernel = functools.partial(_linear_kernel, activation=activation)
    y = pl.pallas_call(
        kernel,
        out_shape=jax.ShapeDtypeStruct((m_pad, n), out_dtype),
        grid_spec=pltpu.PrefetchScalarGridSpec(
            num_scalar_prefetch=0,
            grid=grid,
            in_specs=[
                pl.BlockSpec((tm, tk), lambda i, j, k: (i, k)),
                pl.BlockSpec((tk, tn), lambda i, j, k: (k, j)),
                pl.BlockSpec((1, tn), lambda i, j, k: (0, j)),
            ],
            out_specs=pl.BlockSpec((tm, tn), lambda i, j, k: (i, j)),
            scratch_shapes=[pltpu.VMEM((tm, tn), jnp.float32)],
        ),
        compiler_params=pltpu.CompilerParams(
            dimension_semantics=("parallel", "parallel", "arbitrary"),
            vmem_limit_bytes=budget),
    )(xp, w_t, b)
    return y if m_pad == m else y[:m]


def geglu_pallas(x, wa_t, wb_t, ba, bb, out_dtype):
    """out = (x @ wa_t + ba) * gelu(x @ wb_t + bb), fused in one pallas_call."""
    budget = _vmem_budget()
    m, kdim = x.shape
    n = wa_t.shape[1]
    out_bytes = jnp.dtype(out_dtype).itemsize
    tn = _pick_tile(n, _N_PREFS)
    tk = _pick_tile(kdim, _K_PREFS)

    def foot(tm, tn, tk):
        return (2 * tm * tk * 2 + 2 * (2 * tk * tn * 2) + 2 * (2 * tn * 4)
                + 2 * tm * tn * out_bytes + 2 * tm * tn * 4)

    tm = _choose_tm(m, lambda t: foot(t, tn, tk) <= budget)
    while tm is None and tk > 128 and tk % 2 == 0:
        tk //= 2
        tm = _choose_tm(m, lambda t: foot(t, tn, tk) <= budget)
    if tm is None:
        tm = 8

    m_pad = _round_up(m, tm)
    xp = _pad_rows(x, m_pad)
    grid = (m_pad // tm, n // tn, kdim // tk)
    y = pl.pallas_call(
        _geglu_proj_kernel,
        out_shape=jax.ShapeDtypeStruct((m_pad, n), out_dtype),
        grid_spec=pltpu.PrefetchScalarGridSpec(
            num_scalar_prefetch=0,
            grid=grid,
            in_specs=[
                pl.BlockSpec((tm, tk), lambda i, j, k: (i, k)),
                pl.BlockSpec((tk, tn), lambda i, j, k: (k, j)),
                pl.BlockSpec((tk, tn), lambda i, j, k: (k, j)),
                pl.BlockSpec((1, tn), lambda i, j, k: (0, j)),
                pl.BlockSpec((1, tn), lambda i, j, k: (0, j)),
            ],
            out_specs=pl.BlockSpec((tm, tn), lambda i, j, k: (i, j)),
            scratch_shapes=[pltpu.VMEM((tm, tn), jnp.float32),
                            pltpu.VMEM((tm, tn), jnp.float32)],
        ),
        compiler_params=pltpu.CompilerParams(
            dimension_semantics=("parallel", "parallel", "arbitrary"),
            vmem_limit_bytes=budget),
    )(xp, wa_t, wb_t, ba, bb)
    return y if m_pad == m else y[:m]


# ------------------------------------------------------------------- module --

def init_feed_forward_params(key, dim, dim_out=None, mult=4, glu=False):
    inner = int(dim * mult)
    dim_out = dim if dim_out is None else dim_out
    k1, k2, k3, k4 = jax.random.split(key, 4)

    def u(k, shape, fan_in):  # PyTorch nn.Linear default init
        bound = 1.0 / math.sqrt(fan_in)
        return jax.random.uniform(k, shape, jnp.float32, -bound, bound)

    out1 = inner * 2 if glu else inner
    w1 = u(k1, (out1, dim), dim)          # PyTorch layout (out, in), fp32 master
    b1 = u(k2, (out1,), dim)
    w2 = u(k3, (dim_out, inner), inner)
    b2 = u(k4, (dim_out,), inner)

    params = {"w1": w1, "b1": b1, "w2": w2, "b2": b2,
              "glu": glu, "inner": inner, "dim_out": dim_out}

    # Pre-transposed bf16 kernel weights + row-shaped biases, hoisted out of the
    # forward path (no per-call XLA transpose/convert over the weights).
    # TODO(synk): PyTorch reference is pure fp32; bf16 operands + f32 MXU
    # accumulation is the TPU-native path (matches to ~1e-3 relative).
    if glu:
        params["wa_t"] = jnp.asarray(w1[:inner].T, jnp.bfloat16)
        params["wb_t"] = jnp.asarray(w1[inner:].T, jnp.bfloat16)
        params["ba"] = b1[:inner].reshape(1, -1)
        params["bb"] = b1[inner:].reshape(1, -1)
    else:
        params["w1_t"] = jnp.asarray(w1.T, jnp.bfloat16)
        params["b1_row"] = b1.reshape(1, -1)
    params["w2_t"] = jnp.asarray(w2.T, jnp.bfloat16)
    params["b2_row"] = b2.reshape(1, -1)
    return params


def feed_forward_forward(params, x, out_dtype=jnp.bfloat16, use_fused=True):
    b, n, dim = x.shape
    glu = params["glu"]
    inner = params["inner"]
    dim_out = params["dim_out"]
    m = b * n

    x2 = x.reshape(m, dim).astype(jnp.bfloat16)

    y = None
    if use_fused:
        y = ffn_fused_pallas(x2, params, glu, inner, dim_out, out_dtype)

    if y is None:
        # Fallback: weights too large to stay VMEM-resident -> two tiled calls.
        if glu:
            h = geglu_pallas(x2, params["wa_t"], params["wb_t"],
                             params["ba"], params["bb"], jnp.bfloat16)
        else:
            h = linear_pallas(x2, params["w1_t"], params["b1_row"],
                              jnp.bfloat16, activation="gelu")
        # nn.Dropout(p=0.0) is the identity.
        y = linear_pallas(h, params["w2_t"], params["b2_row"],
                          out_dtype, activation=None)

    return y.reshape(b, n, dim_out)


def feed_forward_ref(params, x):
    # Pure-jnp fp32 reference with the fp32 master weights (same tanh-GELU).
    b, n, dim = x.shape
    x2 = x.reshape(b * n, dim)
    h = x2 @ params["w1"].T + params["b1"]
    if params["glu"]:
        inner = params["inner"]
        h = h[:, :inner] * _gelu(h[:, inner:])
    else:
        h = _gelu(h)
    y = h @ params["w2"].T + params["b2"]
    return y.reshape(b, n, -1)


# --------------------------------------------------------------------- main --

if __name__ == "__main__":
    key = jax.random.PRNGKey(0)
    b, n, dim = 2, 16, 32        # tokens: (batch, seq, channels); inner = 128
    mult = 4
    kx, kp1, kp2 = jax.random.split(key, 3)

    x = jax.random.normal(kx, (b, n, dim), jnp.float32)

    for glu, kp in ((False, kp1), (True, kp2)):
        p = init_feed_forward_params(kp, dim, dim_out=None, mult=mult, glu=glu)
        y_ref = feed_forward_ref(p, x)

        # Primary path: fused, weight-stationary kernel.
        y = feed_forward_forward(p, x)
        jax.block_until_ready(y)
        assert y.shape == (b, n, dim), y.shape
        err = float(jnp.max(jnp.abs(y.astype(jnp.float32) - y_ref)))
        assert jnp.allclose(y.astype(jnp.float32), y_ref, atol=5e-2, rtol=5e-2), \
            f"fused glu={glu} max_abs_err={err}"

        # Fallback path: tiled (M,N,K) kernels (exercised for coverage).
        y2 = feed_forward_forward(p, x, use_fused=False)
        jax.block_until_ready(y2)
        assert y2.shape == (b, n, dim), y2.shape
        err2 = float(jnp.max(jnp.abs(y2.astype(jnp.float32) - y_ref)))
        assert jnp.allclose(y2.astype(jnp.float32), y_ref, atol=5e-2, rtol=5e-2), \
            f"tiled glu={glu} max_abs_err={err2}"

    print("KERNEL_OK")
</pallas_src>

<mosaic_0001>
module attributes {stable_mosaic.version = 11 : i64} {
  func.func @_ffn_gelu_kernel(%arg0: i32, %arg1: memref<32x32xbf16, #tpu.memory_space<vmem>>, %arg2: memref<32x128xbf16, #tpu.memory_space<vmem>>, %arg3: memref<1x128xf32, #tpu.memory_space<vmem>>, %arg4: memref<128x32xbf16, #tpu.memory_space<vmem>>, %arg5: memref<1x32xf32, #tpu.memory_space<vmem>>, %arg6: memref<32x32xbf16, #tpu.memory_space<vmem>>) attributes {dimension_semantics = [#tpu.dimension_semantics<parallel>], iteration_bounds = array<i64: 1>, scalar_prefetch = 0 : i64, scratch_operands = 0 : i64, tpu.core_type = #tpu.core_type<tc>, window_params = [{transform_indices = @transform_0, window_bounds = array<i64: 32, 32>}, {pipeline_mode = #tpu.pipeline_mode<synchronous>, transform_indices = @transform_1, window_bounds = array<i64: 32, 128>}, {pipeline_mode = #tpu.pipeline_mode<synchronous>, transform_indices = @transform_2, window_bounds = array<i64: 1, 128>}, {pipeline_mode = #tpu.pipeline_mode<synchronous>, transform_indices = @transform_3, window_bounds = array<i64: 128, 32>}, {pipeline_mode = #tpu.pipeline_mode<synchronous>, transform_indices = @transform_4, window_bounds = array<i64: 1, 32>}, {transform_indices = @transform_5, window_bounds = array<i64: 32, 32>}]} {
    %c0 = arith.constant 0 : index
    %c0_0 = arith.constant 0 : index
    %0 = vector.load %arg1[%c0, %c0_0] : memref<32x32xbf16, #tpu.memory_space<vmem>>, vector<32x32xbf16>
    %c0_1 = arith.constant 0 : index
    %c0_2 = arith.constant 0 : index
    %1 = vector.load %arg2[%c0_1, %c0_2] : memref<32x128xbf16, #tpu.memory_space<vmem>>, vector<32x128xbf16>
    %cst = arith.constant dense<0.000000e+00> : vector<32x128xf32>
    %2 = tpu.matmul %0, %1, %cst {dimension_numbers = #tpu.dot_dimension_numbers<[1], [0], [0], [1], [0, 0, 1, 1], [], []>} : vector<32x32xbf16>, vector<32x128xbf16>, vector<32x128xf32> -> vector<32x128xf32>
    %c0_3 = arith.constant 0 : index
    %c0_4 = arith.constant 0 : index
    %3 = vector.load %arg3[%c0_3, %c0_4] : memref<1x128xf32, #tpu.memory_space<vmem>>, vector<1x128xf32>
    %4 = vector.broadcast %3 : vector<1x128xf32> to vector<32x128xf32>
    %5 = arith.addf %2, %4 : vector<32x128xf32>
    %cst_5 = arith.constant 5.000000e-01 : f32
    %6 = vector.broadcast %cst_5 : f32 to vector<32x128xf32>
    %7 = arith.mulf %6, %5 : vector<32x128xf32>
    %cst_6 = arith.constant 4.471500e-02 : f32
    %8 = vector.broadcast %cst_6 : f32 to vector<32x128xf32>
    %9 = arith.mulf %8, %5 : vector<32x128xf32>
    %10 = arith.mulf %9, %5 : vector<32x128xf32>
    %11 = arith.mulf %10, %5 : vector<32x128xf32>
    %12 = arith.addf %5, %11 : vector<32x128xf32>
    %cst_7 = arith.constant 0.797884583 : f32
    %13 = vector.broadcast %cst_7 : f32 to vector<32x128xf32>
    %14 = arith.mulf %13, %12 : vector<32x128xf32>
    %15 = math.tanh %14 : vector<32x128xf32>
    %cst_8 = arith.constant 1.000000e+00 : f32
    %16 = vector.broadcast %cst_8 : f32 to vector<32x128xf32>
    %17 = arith.addf %16, %15 : vector<32x128xf32>
    %18 = arith.mulf %7, %17 : vector<32x128xf32>
    %19 = arith.truncf %18 : vector<32x128xf32> to vector<32x128xbf16>
    %c0_9 = arith.constant 0 : index
    %c0_10 = arith.constant 0 : index
    %20 = vector.load %arg4[%c0_9, %c0_10] : memref<128x32xbf16, #tpu.memory_space<vmem>>, vector<128x32xbf16>
    %cst_11 = arith.constant dense<0.000000e+00> : vector<32x32xf32>
    %21 = tpu.matmul %19, %20, %cst_11 {dimension_numbers = #tpu.dot_dimension_numbers<[1], [0], [0], [1], [0, 0, 1, 1], [], []>} : vector<32x128xbf16>, vector<128x32xbf16>, vector<32x32xf32> -> vector<32x32xf32>
    %c0_12 = arith.constant 0 : index
    %c0_13 = arith.constant 0 : index
    %22 = vector.load %arg5[%c0_12, %c0_13] : memref<1x32xf32, #tpu.memory_space<vmem>>, vector<1x32xf32>
    %23 = vector.broadcast %22 : vector<1x32xf32> to vector<32x32xf32>
    %24 = arith.addf %21, %23 : vector<32x32xf32>
    %25 = arith.truncf %24 : vector<32x32xf32> to vector<32x32xbf16>
    %c0_14 = arith.constant 0 : index
    %c0_15 = arith.constant 0 : index
    %26 = vector.load %arg6[%c0_14, %c0_15] : memref<32x32xbf16, #tpu.memory_space<vmem>>, vector<32x32xbf16>
    tpu.vector_store %arg6[%c0_14, %c0_15], %25 {strides = array<i32>} : memref<32x32xbf16, #tpu.memory_space<vmem>>, vector<32x32xbf16>,
    return
  }
  func.func @transform_0(%arg0: i32) -> (i32, i32) {
    %c0_i32 = arith.constant 0 : i32
    %c0_i32_0 = arith.constant 0 : i32
    return %arg0, %c0_i32 : i32, i32
  }
  func.func @transform_1(%arg0: i32) -> (i32, i32) {
    %c0_i32 = arith.constant 0 : i32
    %c0_i32_0 = arith.constant 0 : i32
    %c0_i32_1 = arith.constant 0 : i32
    return %c0_i32, %c0_i32_0 : i32, i32
  }
  func.func @transform_2(%arg0: i32) -> (i32, i32) {
    %c0_i32 = arith.constant 0 : i32
    %c0_i32_0 = arith.constant 0 : i32
    %c0_i32_1 = arith.constant 0 : i32
    return %c0_i32, %c0_i32_0 : i32, i32
  }
  func.func @transform_3(%arg0: i32) -> (i32, i32) {
    %c0_i32 = arith.constant 0 : i32
    %c0_i32_0 = arith.constant 0 : i32
    %c0_i32_1 = arith.constant 0 : i32
    return %c0_i32, %c0_i32_0 : i32, i32
  }
  func.func @transform_4(%arg0: i32) -> (i32, i32) {
    %c0_i32 = arith.constant 0 : i32
    %c0_i32_0 = arith.constant 0 : i32
    %c0_i32_1 = arith.constant 0 : i32
    return %c0_i32, %c0_i32_0 : i32, i32
  }
  func.func @transform_5(%arg0: i32) -> (i32, i32) {
    %c0_i32 = arith.constant 0 : i32
    %c0_i32_0 = arith.constant 0 : i32
    return %arg0, %c0_i32 : i32, i32
  }
}

</mosaic_0001>

<bundles_post_ra>
// kernel: tpu_custom_call.1
= control target key start
LH: loop header
LB: loop body
LE: loop exit
PB: predicated region body
PF: predicated region fallthrough
CT: control target
= control target key end

     0   :  { %vm59_vm0 = vcmask 261120   ;;  %s514_s0 = inlined_call_operand.vmem [shape: bf16[32,32], index: 0, kind: input, shape index: {}]   ;;  %s515_s1 = inlined_call_operand.vmem [shape: bf16[32,128], index: 1, kind: input, shape index: {}]   ;;  %s516_s2 = inlined_call_operand.vmem [shape: f32[1,128], index: 2, kind: input, shape index: {}]   ;;  %s517_s3 = inlined_call_operand.vmem [shape: bf16[128,32], index: 3, kind: input, shape index: {}]   ;;  %s518_s4 = inlined_call_operand.vmem [shape: f32[1,32], index: 4, kind: input, shape index: {}]   ;;  %s519_s5 = inlined_call_operand.hbm [shape: bf16[32,32], index: 5, kind: output, shape index: {}]  }
   0x1   :  { %v379_v0 = vld [vmem:[%s515_s1] sm:$0xff]   ;;  %v380_v1 = vld [vmem:[%s515_s1 + $0x8] sm:$0xff]  }
   0x2   :  { %348 = vmatprep.subr.bf16.mxu0 %v379_v0  ;;  %v381_v2 = vld [vmem:[%s514_s0] sm:$0xff]   ;;  %v382_v3 = vld [vmem:[%s514_s0 + $0x8] sm:$0xff]  }
   0x3   :  { %349 = vmatpush3.bf16.msra.mxu0 %v379_v0  ;;  %352 = vmatprep.mubr.msk.bf16.mxu0 %vm59_vm0, %v381_v2 }
   0x4   :  { %350 = vmatprep.subr.bf16.mxu0 %v380_v1 }
   0x7   :  { %351 = vmatpush3.bf16.msra.mxu0 %v380_v1 }
   0x8   :  { %10 = vsyncpa [#allocation3], 0  ;;  %v383_v4 = vld [vmem:[%s517_s3] sm:$0xff]   ;;  %v384_v5 = vld [vmem:[%s517_s3 + $0x8] sm:$0xff]   ;;  %vm289_vm1 = vcmask 257024   ;;  %s423_s17 = smov [#allocation2]  }
   0x9   :  { %356 = vmatprep.subr.bf16.mxu1 %v383_v4  ;;  %v385_v6 = vld [vmem:[%s517_s3 + $0x10] sm:$0xff]   ;;  %v386_v7 = vld [vmem:[%s517_s3 + $0x18] sm:$0xff]   ;;  %v387_v8 = vld [vmem:[%s517_s3 + $0x20] sm:$0xff]   ;;  %s299_s18 = sshll.u32 %s423_s17, 4  ;;  %s300_s18 = int_to_ptr.vmem [resolvable:$true] %s299_s18 }
   0xa   :  { %353 = vmatmul.mubr.msk.bf16.vlgmr.msra.gmra.mrb[0].mxu0 %vm59_vm0, %v382_v3  ;;  %357 = vmatpush3.bf16.msra.mxu1 %v383_v4  ;;  %v388_v9 = vld [vmem:[%s517_s3 + $0x28] sm:$0xff]   ;;  %v389_v10 = vld [vmem:[%s517_s3 + $0x30] sm:$0xff]   ;;  %v390_v11 = vld [vmem:[%s517_s3 + $0x38] sm:$0xff]   ;;  %p404_p1 = scmp.lt.s32.totalorder %s300_s18, %s300_s18 }
   0xb   :  { %358 = vmatprep.subr.bf16.mxu1 %v384_v5  ;;  %v310_v12 = vld [vmem:[%s516_s2] ss:$0 sm:$0xff] }
   0xc   :  { %v317_v59 = vld [vmem:[%s518_s4] ss:$0 sm:$0xff]  ;;  %s399_s4 = scalar_lea.vmem %s300_s18, 256 }
   0xd   :  { %p400_p0 = scmp.ne.s32.totalorder %s300_s18, %s399_s4  ;;  %p405_p2 = scmp.lt.s32.totalorder %s399_s4, %s399_s4 }
   0xe   :  { %359 = vmatpush3.bf16.msra.mxu1 %v384_v5 }
   0xf   :  { %360 = vmatprep.subr.bf16.mxu1 %v385_v6  ;;  %p406_p3 = por %p405_p2, %p404_p1 }
  0x11   :  { %p407_p4 = pnand %p406_p3, %p400_p0 }
  0x12   :  { %361 = vmatpush3.bf16.msra.mxu1 %v385_v6 }
  0x13   :  { %362 = vmatprep.subr.bf16.mxu1 %v386_v7 }
  0x16   :  { %363 = vmatpush3.bf16.msra.mxu1 %v386_v7 }
  0x17   :  { %364 = vmatprep.subr.bf16.mxu1 %v387_v8 }
  0x1a   :  { %365 = vmatpush3.bf16.msra.mxu1 %v387_v8 }
  0x1b   :  { %366 = vmatprep.subr.bf16.mxu1 %v388_v9 }
  0x1e   :  { %367 = vmatpush3.bf16.msra.mxu1 %v388_v9 }
  0x1f   :  { %368 = vmatprep.subr.bf16.mxu1 %v389_v10 }
  0x22   :  { %369 = vmatpush3.bf16.msra.mxu1 %v389_v10 }
  0x23   :  { %370 = vmatprep.subr.bf16.mxu1 %v390_v11 }
  0x26   :  { %371 = vmatpush3.bf16.msra.mxu1 %v390_v11 }
  0xdd   :  { %v354_v13 = vpop.f32.mrb[0].mxu0 }
  0xde   :  { %v109_v14 = vadd.f32 %v354_v13, %v310_v12  ;;  %v100_v15 = vpop.f32.mrb[1].mxu0 }
  0xdf   :  { %v101_v16 = vadd.f32 %v310_v12, %v100_v15  ;;  %v355_v17 = vpop.f32.mrb[2].mxu0 }
  0xe0   :  { %v121_v18 = vmul.f32 0.044715, %v109_v14  ;;  %v112_v19 = vadd.f32 %v355_v17, %v310_v12  ;;  %v103_v20 = vpop.f32.mrb[3].mxu0  ;;  %v117_v47 = vmul.f32 0.5, %v109_v14 }
  0xe1   :  { %v119_v21 = vmul.f32 0.044715, %v101_v16  ;;  %v104_v22 = vadd.f32 %v310_v12, %v103_v20  ;;  %v115_v50 = vmul.f32 0.5, %v101_v16 }
  0xe2   :  { %v125_v23 = vmul.f32 %v121_v18, %v109_v14  ;;  %v122_v24 = vmul.f32 0.044715, %v112_v19  ;;  %v118_v48 = vmul.f32 0.5, %v112_v19 }
  0xe3   :  { %v120_v25 = vmul.f32 0.044715, %v104_v22  ;;  %v123_v26 = vmul.f32 %v119_v21, %v101_v16  ;;  %v116_v51 = vmul.f32 0.5, %v104_v22 }
  0xe4   :  { %v129_v27 = vmul.f32 %v125_v23, %v109_v14  ;;  %v126_v28 = vmul.f32 %v122_v24, %v112_v19 }
  0xe5   :  { %v124_v29 = vmul.f32 %v120_v25, %v104_v22  ;;  %v127_v30 = vmul.f32 %v123_v26, %v101_v16 }
  0xe6   :  { %v130_v31 = vmul.f32 %v126_v28, %v112_v19  ;;  %v133_v32 = vadd.f32 %v129_v27, %v109_v14 }
  0xe7   :  { %v128_v33 = vmul.f32 %v124_v29, %v104_v22  ;;  %v131_v34 = vadd.f32 %v127_v30, %v101_v16 }
  0xe8   :  { %v134_v35 = vadd.f32 %v130_v31, %v112_v19  ;;  %v137_v36 = vmul.f32 0.7978846, %v133_v32 }
  0xe9   :  { %v132_v37 = vadd.f32 %v128_v33, %v104_v22  ;;  %v135_v38 = vmul.f32 0.7978846, %v131_v34 }
  0xea   :  { %v138_v39 = vmul.f32 0.7978846, %v134_v35  ;;  %391 = vtanh.f32 %v137_v36 }
  0xeb   :  { %v136_v40 = vmul.f32 0.7978846, %v132_v37  ;;  %393 = vtanh.f32 %v135_v38 }
  0xec   :  { %395 = vtanh.f32 %v138_v39 }
  0xed   :  { %397 = vtanh.f32 %v136_v40 }
  0xf4   :  { %v392_v41 = vpop.eup %391 }
  0xf5   :  { %v394_v42 = vpop.eup %393  ;;  %v145_v43 = vadd.f32 1.0, %v392_v41 }
  0xf6   :  { %v396_v44 = vpop.eup %395  ;;  %v143_v45 = vadd.f32 1.0, %v394_v42 }
  0xf7   :  { %v398_v46 = vpop.eup %397  ;;  %v146_v49 = vadd.f32 1.0, %v396_v44  ;;  %v149_v53 = vmul.f32 %v145_v43, %v117_v47 }
  0xf8   :  { %v144_v52 = vadd.f32 1.0, %v398_v46  ;;  %v147_v55 = vmul.f32 %v143_v45, %v115_v50 }
  0xf9   :  { %v150_v54 = vmul.f32 %v146_v49, %v118_v48 }
  0xfa   :  { %v148_v56 = vmul.f32 %v144_v52, %v116_v51 }
  0xfb   :  { %v152_v57 = vpack.c.bf16 %v150_v54, %v149_v53 }
  0xfc   :  { %v151_v58 = vpack.c.bf16 %v148_v56, %v147_v55 }
  0xfe   :  { %372 = vmatprep.mubr.bf16.mxu1 %v151_v58 }
  0xff   :  { %373 = vmatmul.mubr.bf16.vlgmr.msra.gmra.mrb[0].mxu1 %v152_v57 }
 0x1d2   :  { %v374_v60 = vpop.f32.mrb[0].mxu1 }
 0x1d3   :  { %v267_v61 = vadd.f32 %v374_v60, %v317_v59  ;;  %v258_v62 = vpop.f32.mrb[1].mxu1 }
 0x1d4   :  { %v259_v63 = vadd.f32 %v317_v59, %v258_v62  ;;  %v375_v0 = vpop.f32.mrb[2].mxu1 }
 0x1d5   :  { %v332_v1 = vpack.c.bf16 %v267_v61, %v267_v61  ;;  %v270_v2 = vadd.f32 %v375_v0, %v317_v59  ;;  %v261_v3 = vpop.f32.mrb[3].mxu1 }
 0x1d6   :  { %v330_v4 = vpack.c.bf16 %v259_v63, %v259_v63  ;;  %v262_v5 = vadd.f32 %v317_v59, %v261_v3 }
 0x1d7   :  { %292 = vst.msk [vmem:[#allocation2 + $0x8] sm:$0xf] %vm289_vm1, %v332_v1  ;;  %v333_v6 = vpack.c.bf16 %v270_v2, %v270_v2 }
 0x1d8   :  { %290 = vst.msk [vmem:[#allocation2] sm:$0xf] %vm289_vm1, %v330_v4  ;;  %v331_v7 = vpack.c.bf16 %v262_v5, %v262_v5 }
 0x1d9   :  { %293 = vst.msk [vmem:[#allocation2 + $0xc] sm:$0xf] %vm289_vm1, %v333_v6 }
 0x1da   :  { %291 = vst.msk [vmem:[#allocation2 + $0x4] sm:$0xf] %vm289_vm1, %v331_v7 }
 0x1db   :  { %410 = shalt.err (!%p407_p4)
}
 0x1dc   :  { %s411_s21 = scalar_lea.hbm %s519_s5, 256 }
 0x1dd   :  { %p412_p5 = scmp.ne.s32.totalorder %s519_s5, %s411_s21  ;;  %p415_p6 = scmp.lt.u32.totalorder %s411_s21, %s519_s5 }
 0x1df   :  { %p417_p7 = pnand %p415_p6, %p412_p5 }
 0x1e1   :  { %420 = shalt.err (!%p417_p7)
}
 0x1e2   :  { %s424_s26 = smov 64   ;;  %s425_s27 = smov 4  }
 0x1e3   :  { %305 = dma.vmem_to_hbm [thread:$0]  %s300_s18, 256, %s519_s5, [#allocation3], %s424_s26, %s424_s26, %s425_s27  }
 0x1e4   :  { %421 = dma.done.wait [#allocation3], 256  }
 0x1e5   :  { %422 = vsyncadd [#allocation3], 4294967040 }
 0x1e6   :  { %309 = vsyncpa [#allocation3], 1 }

</bundles_post_ra>
